<compile_context>
chip_gen: v7x
topology: tpu7x:2x2x1
jax: 0.10.0
libtpu: 0.0.40
codegen_flags: <defaults>
</compile_context>

<pallas_src>
import jax
import jax.numpy as jnp
from jax.experimental import pallas as pl
from jax.experimental.pallas import tpu as pltpu


def _clip_cls_loc_kernel(
    x_ref,                       # (tile, Cw+Ci)  bf16   concat(wifi, imu) rows
    w_emb_ref, b_emb_ref,        # (Cw+Ci, 2D) bf16, (1, 2D) f32  block-diag embed
    w_fuse_ref, b_fuse_ref,      # (2D, D)    bf16, (1, D)  f32   fusion conv
    w_head_ref, b_head_ref,      # (D, D)     bf16, (1, D)  f32   shared head conv
    w_out_ref, b_out_ref,        # (D, 128)   bf16, (1, 128) f32  merged loc|cls
    out_ref,                     # (tile, 128) f32   lanes 0:2 loc, 2:32 cls
):
    bf16 = jnp.bfloat16
    f32 = jnp.float32

    # fused wifi/imu pointwise-conv embeddings + ReLU  ->  [wifi_emb | imu_emb]
    emb = jnp.maximum(
        jnp.dot(x_ref[...], w_emb_ref[...], preferred_element_type=f32)
        + b_emb_ref[...], 0.0)

    # fusion(imu, wifi): concat along channels then 1x1 conv == one K=2D matmul
    sig = jnp.maximum(
        jnp.dot(emb.astype(bf16), w_fuse_ref[...], preferred_element_type=f32)
        + b_fuse_ref[...], 0.0)

    # ClsLocHead shared layer (head_layer=1) + ReLU
    h = jnp.maximum(
        jnp.dot(sig.astype(bf16), w_head_ref[...], preferred_element_type=f32)
        + b_head_ref[...], 0.0)

    # merged localization (2) + classification (30) heads, packed in 128 lanes
    out_ref[...] = (
        jnp.dot(h.astype(bf16), w_out_ref[...], preferred_element_type=f32)
        + b_out_ref[...])


def _pick_tile(rows, max_tile=1024):
    """Largest power-of-two tile <= max_tile keeping >= 2 grid steps when the
    row count allows it (so both v7x TensorCores get work).  Rows are padded
    up to a tile multiple by the caller, so divisibility is not required."""
    t = max_tile
    while t > 8 and t * 2 > rows:
        t //= 2
    return max(t, 8)


def clip_cls_loc_forward(wifi, imu, packed, *, num_classes=30, max_tile=1024):
    """wifi: (B, Cw, L), imu: (B, Ci, L)  -- PyTorch NCL convention."""
    B, Cw, L = wifi.shape
    _, Ci, _ = imu.shape
    D2 = packed["w_emb"].shape[1]
    D = D2 // 2
    PAD = packed["w_out"].shape[1]          # 128-lane packed loc|cls output
    Cin = Cw + Ci
    rows = B * L

    # NCL -> rows (B*L, C), channels last, wifi|imu concatenated, bf16 operands
    x_rows = jnp.concatenate(
        [jnp.transpose(wifi, (0, 2, 1)).reshape(rows, Cw),
         jnp.transpose(imu, (0, 2, 1)).reshape(rows, Ci)],
        axis=1).astype(jnp.bfloat16)

    tile = _pick_tile(rows, max_tile)
    rows_pad = pl.cdiv(rows, tile) * tile
    if rows_pad != rows:
        x_rows = jnp.pad(x_rows, ((0, rows_pad - rows), (0, 0)))
    grid = (rows_pad // tile,)

    full = lambda r, c: pl.BlockSpec((r, c), lambda i: (0, 0))

    out = pl.pallas_call(
        _clip_cls_loc_kernel,
        out_shape=jax.ShapeDtypeStruct((rows_pad, PAD), jnp.float32),
        grid_spec=pltpu.PrefetchScalarGridSpec(
            num_scalar_prefetch=0,
            grid=grid,
            in_specs=[
                pl.BlockSpec((tile, Cin), lambda i: (i, 0)),
                full(Cin, D2), full(1, D2),
                full(D2, D), full(1, D),
                full(D, D), full(1, D),
                full(D, PAD), full(1, PAD),
            ],
            out_specs=pl.BlockSpec((tile, PAD), lambda i: (i, 0)),
        ),
        compiler_params=pltpu.CompilerParams(
            dimension_semantics=("parallel",),
            vmem_limit_bytes=32 * 1024 * 1024),
    )(
        x_rows,
        packed["w_emb"], packed["b_emb"],
        packed["w_fuse"], packed["b_fuse"],
        packed["w_head"], packed["b_head"],
        packed["w_out"], packed["b_out"],
    )

    out = out[:rows]
    loc = out[:, :2].reshape(B, L, 2)
    conf = out[:, 2:2 + num_classes].reshape(B, L, num_classes)

    # priors (pure glue, identical to the PyTorch __init__): t=2048, layer_num=1
    t = 2048
    priors = ((jnp.arange(t, dtype=jnp.float32) + 1.0) / t).reshape(1, t, 1)

    return {"loc": loc, "conf": conf, "priors": priors}


def make_params(key, Cw, Ci, D, num_classes=30):
    """Logical (unfused, f32) per-layer weights mirroring the PyTorch module."""
    ks = jax.random.split(key, 14)
    s = 0.05
    return {
        "ww": s * jax.random.normal(ks[0], (Cw, D), jnp.float32),
        "bw": s * jax.random.normal(ks[1], (1, D), jnp.float32),
        "wi": s * jax.random.normal(ks[2], (Ci, D), jnp.float32),
        "bi": s * jax.random.normal(ks[3], (1, D), jnp.float32),
        "wf_imu": s * jax.random.normal(ks[4], (D, D), jnp.float32),
        "wf_wifi": s * jax.random.normal(ks[5], (D, D), jnp.float32),
        "bf": s * jax.random.normal(ks[6], (1, D), jnp.float32),
        "wh": s * jax.random.normal(ks[7], (D, D), jnp.float32),
        "bh": s * jax.random.normal(ks[8], (1, D), jnp.float32),
        "wl": s * jax.random.normal(ks[9], (D, 2), jnp.float32),
        "bl": s * jax.random.normal(ks[10], (1, 2), jnp.float32),
        "wc": s * jax.random.normal(ks[11], (D, num_classes), jnp.float32),
        "bc": s * jax.random.normal(ks[12], (1, num_classes), jnp.float32),
    }


def pack_params(p, Cw, Ci, D, num_classes=30, pad=128):
    """Fuse logical weights into the kernel layout (bf16 matmul operands)."""
    bf16 = jnp.bfloat16
    # block-diagonal embedding weight: [wifi|imu] rows -> [wifi_emb | imu_emb]
    w_emb = jnp.zeros((Cw + Ci, 2 * D), jnp.float32)
    w_emb = w_emb.at[:Cw, :D].set(p["ww"]).at[Cw:, D:].set(p["wi"])
    b_emb = jnp.concatenate([p["bw"], p["bi"]], axis=1)
    # fusion: emb = [wifi_emb | imu_emb] so stack [wf_wifi; wf_imu]
    w_fuse = jnp.concatenate([p["wf_wifi"], p["wf_imu"]], axis=0)
    # merged loc|cls head packed into one 128-lane output
    w_out = jnp.zeros((D, pad), jnp.float32)
    w_out = w_out.at[:, :2].set(p["wl"]).at[:, 2:2 + num_classes].set(p["wc"])
    b_out = jnp.zeros((1, pad), jnp.float32)
    b_out = b_out.at[:, :2].set(p["bl"]).at[:, 2:2 + num_classes].set(p["bc"])
    return {
        "w_emb": w_emb.astype(bf16), "b_emb": b_emb,
        "w_fuse": w_fuse.astype(bf16), "b_fuse": p["bf"],
        "w_head": p["wh"].astype(bf16), "b_head": p["bh"],
        "w_out": w_out.astype(bf16), "b_out": b_out,
    }


def _reference_forward(wifi, imu, p, num_classes=30):
    """Pure-JAX f32 reference of the PyTorch forward (test mode)."""
    B, Cw, L = wifi.shape
    _, Ci, _ = imu.shape
    w = jnp.transpose(wifi, (0, 2, 1)).reshape(-1, Cw)
    im = jnp.transpose(imu, (0, 2, 1)).reshape(-1, Ci)
    we = jnp.maximum(w @ p["ww"] + p["bw"], 0.0)
    ie = jnp.maximum(im @ p["wi"] + p["bi"], 0.0)
    sig = jnp.maximum(ie @ p["wf_imu"] + we @ p["wf_wifi"] + p["bf"], 0.0)
    h = jnp.maximum(sig @ p["wh"] + p["bh"], 0.0)
    loc = (h @ p["wl"] + p["bl"]).reshape(B, L, 2)
    conf = (h @ p["wc"] + p["bc"]).reshape(B, L, num_classes)
    return loc, conf


if __name__ == "__main__":
    key = jax.random.PRNGKey(0)
    k_w, k_i, k_p = jax.random.split(key, 3)

    B, Cw, Ci, L, D = 2, 16, 8, 128, 128
    NUM_CLASSES = 30

    wifi = jax.random.normal(k_w, (B, Cw, L), jnp.float32)
    imu = jax.random.normal(k_i, (B, Ci, L), jnp.float32)
    params = make_params(k_p, Cw, Ci, D, NUM_CLASSES)
    packed = pack_params(params, Cw, Ci, D, NUM_CLASSES)

    out = clip_cls_loc_forward(wifi, imu, packed, num_classes=NUM_CLASSES)
    jax.block_until_ready(out)

    # sanity-check against a pure-JAX f32 reference (kernel uses bf16 operands
    # with f32 accumulation, so tolerance is loosened accordingly)
    ref_loc, ref_conf = _reference_forward(wifi, imu, params, NUM_CLASSES)
    assert out["loc"].shape == (B, L, 2)
    assert out["conf"].shape == (B, L, NUM_CLASSES)
    assert out["priors"].shape == (1, 2048, 1)
    assert jnp.allclose(out["loc"], ref_loc, atol=2e-2, rtol=2e-2)
    assert jnp.allclose(out["conf"], ref_conf, atol=2e-2, rtol=2e-2)

    print("KERNEL_OK")
</pallas_src>

<mosaic_0001>
module attributes {stable_mosaic.version = 11 : i64} {
  func.func @_clip_cls_loc_kernel(%arg0: i32, %arg1: memref<128x24xbf16, #tpu.memory_space<vmem>>, %arg2: memref<24x256xbf16, #tpu.memory_space<vmem>>, %arg3: memref<1x256xf32, #tpu.memory_space<vmem>>, %arg4: memref<256x128xbf16, #tpu.memory_space<vmem>>, %arg5: memref<1x128xf32, #tpu.memory_space<vmem>>, %arg6: memref<128x128xbf16, #tpu.memory_space<vmem>>, %arg7: memref<1x128xf32, #tpu.memory_space<vmem>>, %arg8: memref<128x128xbf16, #tpu.memory_space<vmem>>, %arg9: memref<1x128xf32, #tpu.memory_space<vmem>>, %arg10: memref<128x128xf32, #tpu.memory_space<vmem>>) attributes {dimension_semantics = [#tpu.dimension_semantics<parallel>], iteration_bounds = array<i64: 2>, scalar_prefetch = 0 : i64, scratch_operands = 0 : i64, tpu.core_type = #tpu.core_type<tc>, window_params = [{transform_indices = @transform_0, window_bounds = array<i64: 128, 24>}, {pipeline_mode = #tpu.pipeline_mode<synchronous>, transform_indices = @transform_1, window_bounds = array<i64: 24, 256>}, {pipeline_mode = #tpu.pipeline_mode<synchronous>, transform_indices = @transform_2, window_bounds = array<i64: 1, 256>}, {pipeline_mode = #tpu.pipeline_mode<synchronous>, transform_indices = @transform_3, window_bounds = array<i64: 256, 128>}, {pipeline_mode = #tpu.pipeline_mode<synchronous>, transform_indices = @transform_4, window_bounds = array<i64: 1, 128>}, {pipeline_mode = #tpu.pipeline_mode<synchronous>, transform_indices = @transform_5, window_bounds = array<i64: 128, 128>}, {pipeline_mode = #tpu.pipeline_mode<synchronous>, transform_indices = @transform_6, window_bounds = array<i64: 1, 128>}, {pipeline_mode = #tpu.pipeline_mode<synchronous>, transform_indices = @transform_7, window_bounds = array<i64: 128, 128>}, {pipeline_mode = #tpu.pipeline_mode<synchronous>, transform_indices = @transform_8, window_bounds = array<i64: 1, 128>}, {transform_indices = @transform_9, window_bounds = array<i64: 128, 128>}]} {
    %c0 = arith.constant 0 : index
    %c0_0 = arith.constant 0 : index
    %0 = vector.load %arg1[%c0, %c0_0] : memref<128x24xbf16, #tpu.memory_space<vmem>>, vector<128x24xbf16>
    %c0_1 = arith.constant 0 : index
    %c0_2 = arith.constant 0 : index
    %1 = vector.load %arg2[%c0_1, %c0_2] : memref<24x256xbf16, #tpu.memory_space<vmem>>, vector<24x256xbf16>
    %cst = arith.constant dense<0.000000e+00> : vector<128x256xf32>
    %2 = tpu.matmul %0, %1, %cst {dimension_numbers = #tpu.dot_dimension_numbers<[1], [0], [0], [1], [0, 0, 1, 1], [], []>} : vector<128x24xbf16>, vector<24x256xbf16>, vector<128x256xf32> -> vector<128x256xf32>
    %c0_3 = arith.constant 0 : index
    %c0_4 = arith.constant 0 : index
    %3 = vector.load %arg3[%c0_3, %c0_4] : memref<1x256xf32, #tpu.memory_space<vmem>>, vector<1x256xf32>
    %4 = vector.broadcast %3 : vector<1x256xf32> to vector<128x256xf32>
    %5 = arith.addf %2, %4 : vector<128x256xf32>
    %cst_5 = arith.constant 0.000000e+00 : f32
    %6 = vector.broadcast %cst_5 : f32 to vector<128x256xf32>
    %7 = arith.maximumf %5, %6 : vector<128x256xf32>
    %8 = arith.truncf %7 : vector<128x256xf32> to vector<128x256xbf16>
    %c0_6 = arith.constant 0 : index
    %c0_7 = arith.constant 0 : index
    %9 = vector.load %arg4[%c0_6, %c0_7] : memref<256x128xbf16, #tpu.memory_space<vmem>>, vector<256x128xbf16>
    %cst_8 = arith.constant dense<0.000000e+00> : vector<128x128xf32>
    %10 = tpu.matmul %8, %9, %cst_8 {dimension_numbers = #tpu.dot_dimension_numbers<[1], [0], [0], [1], [0, 0, 1, 1], [], []>} : vector<128x256xbf16>, vector<256x128xbf16>, vector<128x128xf32> -> vector<128x128xf32>
    %c0_9 = arith.constant 0 : index
    %c0_10 = arith.constant 0 : index
    %11 = vector.load %arg5[%c0_9, %c0_10] : memref<1x128xf32, #tpu.memory_space<vmem>>, vector<1x128xf32>
    %12 = vector.broadcast %11 : vector<1x128xf32> to vector<128x128xf32>
    %13 = arith.addf %10, %12 : vector<128x128xf32>
    %cst_11 = arith.constant 0.000000e+00 : f32
    %14 = vector.broadcast %cst_11 : f32 to vector<128x128xf32>
    %15 = arith.maximumf %13, %14 : vector<128x128xf32>
    %16 = arith.truncf %15 : vector<128x128xf32> to vector<128x128xbf16>
    %c0_12 = arith.constant 0 : index
    %c0_13 = arith.constant 0 : index
    %17 = vector.load %arg6[%c0_12, %c0_13] : memref<128x128xbf16, #tpu.memory_space<vmem>>, vector<128x128xbf16>
    %cst_14 = arith.constant dense<0.000000e+00> : vector<128x128xf32>
    %18 = tpu.matmul %16, %17, %cst_14 {dimension_numbers = #tpu.dot_dimension_numbers<[1], [0], [0], [1], [0, 0, 1, 1], [], []>} : vector<128x128xbf16>, vector<128x128xbf16>, vector<128x128xf32> -> vector<128x128xf32>
    %c0_15 = arith.constant 0 : index
    %c0_16 = arith.constant 0 : index
    %19 = vector.load %arg7[%c0_15, %c0_16] : memref<1x128xf32, #tpu.memory_space<vmem>>, vector<1x128xf32>
    %20 = vector.broadcast %19 : vector<1x128xf32> to vector<128x128xf32>
    %21 = arith.addf %18, %20 : vector<128x128xf32>
    %cst_17 = arith.constant 0.000000e+00 : f32
    %22 = vector.broadcast %cst_17 : f32 to vector<128x128xf32>
    %23 = arith.maximumf %21, %22 : vector<128x128xf32>
    %24 = arith.truncf %23 : vector<128x128xf32> to vector<128x128xbf16>
    %c0_18 = arith.constant 0 : index
    %c0_19 = arith.constant 0 : index
    %25 = vector.load %arg8[%c0_18, %c0_19] : memref<128x128xbf16, #tpu.memory_space<vmem>>, vector<128x128xbf16>
    %cst_20 = arith.constant dense<0.000000e+00> : vector<128x128xf32>
    %26 = tpu.matmul %24, %25, %cst_20 {dimension_numbers = #tpu.dot_dimension_numbers<[1], [0], [0], [1], [0, 0, 1, 1], [], []>} : vector<128x128xbf16>, vector<128x128xbf16>, vector<128x128xf32> -> vector<128x128xf32>
    %c0_21 = arith.constant 0 : index
    %c0_22 = arith.constant 0 : index
    %27 = vector.load %arg9[%c0_21, %c0_22] : memref<1x128xf32, #tpu.memory_space<vmem>>, vector<1x128xf32>
    %28 = vector.broadcast %27 : vector<1x128xf32> to vector<128x128xf32>
    %29 = arith.addf %26, %28 : vector<128x128xf32>
    %c0_23 = arith.constant 0 : index
    %c0_24 = arith.constant 0 : index
    %30 = vector.load %arg10[%c0_23, %c0_24] : memref<128x128xf32, #tpu.memory_space<vmem>>, vector<128x128xf32>
    tpu.vector_store %arg10[%c0_23, %c0_24], %29 {strides = array<i32>} : memref<128x128xf32, #tpu.memory_space<vmem>>, vector<128x128xf32>,
    return
  }
  func.func @transform_0(%arg0: i32) -> (i32, i32) {
    %c0_i32 = arith.constant 0 : i32
    %c0_i32_0 = arith.constant 0 : i32
    return %arg0, %c0_i32 : i32, i32
  }
  func.func @transform_1(%arg0: i32) -> (i32, i32) {
    %c0_i32 = arith.constant 0 : i32
    %c0_i32_0 = arith.constant 0 : i32
    %c0_i32_1 = arith.constant 0 : i32
    return %c0_i32, %c0_i32_0 : i32, i32
  }
  func.func @transform_2(%arg0: i32) -> (i32, i32) {
    %c0_i32 = arith.constant 0 : i32
    %c0_i32_0 = arith.constant 0 : i32
    %c0_i32_1 = arith.constant 0 : i32
    return %c0_i32, %c0_i32_0 : i32, i32
  }
  func.func @transform_3(%arg0: i32) -> (i32, i32) {
    %c0_i32 = arith.constant 0 : i32
    %c0_i32_0 = arith.constant 0 : i32
    %c0_i32_1 = arith.constant 0 : i32
    return %c0_i32, %c0_i32_0 : i32, i32
  }
  func.func @transform_4(%arg0: i32) -> (i32, i32) {
    %c0_i32 = arith.constant 0 : i32
    %c0_i32_0 = arith.constant 0 : i32
    %c0_i32_1 = arith.constant 0 : i32
    return %c0_i32, %c0_i32_0 : i32, i32
  }
  func.func @transform_5(%arg0: i32) -> (i32, i32) {
    %c0_i32 = arith.constant 0 : i32
    %c0_i32_0 = arith.constant 0 : i32
    %c0_i32_1 = arith.constant 0 : i32
    return %c0_i32, %c0_i32_0 : i32, i32
  }
  func.func @transform_6(%arg0: i32) -> (i32, i32) {
    %c0_i32 = arith.constant 0 : i32
    %c0_i32_0 = arith.constant 0 : i32
    %c0_i32_1 = arith.constant 0 : i32
    return %c0_i32, %c0_i32_0 : i32, i32
  }
  func.func @transform_7(%arg0: i32) -> (i32, i32) {
    %c0_i32 = arith.constant 0 : i32
    %c0_i32_0 = arith.constant 0 : i32
    %c0_i32_1 = arith.constant 0 : i32
    return %c0_i32, %c0_i32_0 : i32, i32
  }
  func.func @transform_8(%arg0: i32) -> (i32, i32) {
    %c0_i32 = arith.constant 0 : i32
    %c0_i32_0 = arith.constant 0 : i32
    %c0_i32_1 = arith.constant 0 : i32
    return %c0_i32, %c0_i32_0 : i32, i32
  }
  func.func @transform_9(%arg0: i32) -> (i32, i32) {
    %c0_i32 = arith.constant 0 : i32
    %c0_i32_0 = arith.constant 0 : i32
    return %arg0, %c0_i32 : i32, i32
  }
}

</mosaic_0001>

<bundles_post_ra>
// kernel: tpu_custom_call.1
= control target key start
LH: loop header
LB: loop body
LE: loop exit
PB: predicated region body
PF: predicated region fallthrough
CT: control target
= control target key end

     0   :  { %14 = vsyncpa [#allocation3], 0  ;;  %s2275_s0 = inlined_call_operand.vmem [shape: bf16[256,24], index: 0, kind: input, shape index: {}]   ;;  %s2276_s1 = inlined_call_operand.vmem [shape: bf16[24,256], index: 1, kind: input, shape index: {}]   ;;  %s2277_s2 = inlined_call_operand.vmem [shape: f32[1,256], index: 2, kind: input, shape index: {}]   ;;  %s2278_s3 = inlined_call_operand.vmem [shape: bf16[256,128], index: 3, kind: input, shape index: {}]   ;;  %s2279_s4 = inlined_call_operand.vmem [shape: f32[1,128], index: 4, kind: input, shape index: {}]   ;;  %s2280_s5 = inlined_call_operand.hbm [shape: bf16[128,128], index: 5, kind: input, shape index: {}]   ;;  %s2281_s6 = inlined_call_operand.vmem [shape: f32[1,128], index: 6, kind: input, shape index: {}]   ;;  %s2282_s7 = inlined_call_operand.hbm [shape: bf16[128,128], index: 7, kind: input, shape index: {}]   ;;  %s2283_s8 = inlined_call_operand.vmem [shape: f32[1,128], index: 8, kind: input, shape index: {}]   ;;  %s2284_s9 = inlined_call_operand.hbm [shape: f32[256,128], index: 9, kind: output, shape index: {}]  }
   0x1   :  { %15 = vsyncpa [#allocation6], 0 }
   0x2   :  { %16 = vsyncpa [#allocation4], 0 }
   0x3   :  { %18 = vsyncpa [#allocation4 + $0x1], 0  ;;  %s1919_s30 = smov 0   ;;  %s1921_s10 = smov 0  }
   0x4   :  { %s1923_s11 = smov 0   ;;  %s1925_s12 = smov 0  }
   0x5 LB: > { %2291 = sst [smem:[#allocation11_spill]] %s1855_s11  ;;  %s1940_s13 = sadd.s32 4294967295, %s1859_s12   ;;  %s1859_s12 = sphi %s1925_s12, %s2305_s12   ;;  %s1855_s11 = sphi %s1923_s11, %s2307_s11   ;;  %s1851_s10 = sphi %s1921_s10, %s2309_s10   ;;  %s1847_s30 = sphi %s1919_s30, %s2308_s30  }
   0x6   : > { %s1374_s14 = sadd.s32 4294967294, %s1859_s12   ;;  %s1944_s15 = sadd.s32 1, %s1859_s12  }
   0x7   : > { %2292 = sst [smem:[#allocation12_spill]] %s1944_s15  ;;  %s225_s16 = sadd.s32 1, %s1855_s11 }
   0x8   : > { %s222_s17 = ssub.s32 %s1859_s12, %s1944_s15  ;;  %p235_p0 = scmp.ne.s32.totalorder %s1855_s11, %s1851_s10 }
   0x9   : > { %p223_p1 = scmp.eq.s32.totalorder %s222_s17, 0  ;;  %p236_p2 = scmp.eq.s32.totalorder %s1940_s13, 1 }
   0xa   : > { %p241_p3 = scmp.ne.s32.totalorder %s1851_s10, %s1847_s30  ;;  %p242_p4 = scmp.eq.s32.totalorder %s1374_s14, 1 }
   0xb   : > { %s1955_s18 = scalar_select %p223_p1, %s1855_s11, %s225_s16  }
   0xc   : > { %p1957_p5 = por %p236_p2, %p235_p0  ;;  %p1961_p6 = por %p242_p4, %p241_p3 }
   0xd   : > { %2293 = sst [smem:[#allocation13_spill]] %s1955_s18  ;;  %p1375_p7 = scmp.ge.s32.totalorder %s1859_s12, 1 }
   0xe   : > { %s2294_s19 = scalar_select %p1957_p5, 1, 0 }
   0xf   : > { %s2295_s20 = scalar_select %p1961_p6, 1, 0 }
  0x10   : > { %p249_p8 = scmp.lt.s32.totalorder %s1859_s12, 3  ;;  %p2285_p9 = scmp.eq.s32.totalorder %s1940_s13, 0 }
  0x11   : > { %s1861_s22 = smov [#allocation2]   ;;  %s1862_s25 = smov [#allocation5]  }
  0x12   : > { %p1968_p10 = pnand %p1375_p7, %p249_p8  ;;  %s273_s23 = sshll.u32 %s1861_s22, 4  ;;  %s274_s23 = int_to_ptr.vmem [resolvable:$true] %s273_s23 }
  0x13   : > { %s289_s26 = sshll.u32 %s1862_s25, 4  ;;  %s1733_s29 = scalar_lea.hbm %s2280_s5, 1024  ;;  %s1980_s26 = int_to_ptr.vmem [resolvable:$true] %s289_s26 }
  0x14   : > { %s2296_s21 = scalar_select %p1968_p10, 1, 0 }
  0x15   : > { %p1633_p11 = pneg %p1968_p10  ;;  %p1734_p13 = scmp.ne.s32.totalorder %s2280_s5, %s1733_s29 }
  0x16   : > { %p1740_p3 = scmp.lt.u32.totalorder %s1733_s29, %s2280_s5 }
  0x17   : > { %p1976_p12 = pnand %p2285_p9, %p1633_p11 }
  0x19   : > { %p1735_p0 = pneg %p1976_p12 }
  0x1b   : > { %p1736_p1 = pnand %p1735_p0, %p1734_p13 }
  0x1d   : > { %p1737_p2 = pneg %p1736_p1 }
  0x1f   : > { %p1742_p4 = pnand %p1740_p3, %p1737_p2 }
  0x21   : > { %1745 = shalt.err (!%p1742_p4)
}
  0x22   : > { %s1746_s25 = scalar_lea.vmem %s274_s23, 1024  ;;  %p1754_p9 = scmp.lt.s32.totalorder %s274_s23, %s274_s23 }
  0x23   : > { %p1747_p7 = scmp.ne.s32.totalorder %s274_s23, %s1746_s25  ;;  %p1755_p6 = scmp.lt.s32.totalorder %s1746_s25, %s1746_s25 }
  0x25   : > { %p1749_p8 = pnand %p1747_p7, %p1735_p0  ;;  %p1756_p5 = por %p1755_p6, %p1754_p9 }
  0x27   : > { %p1750_p11 = pneg %p1749_p8 }
  0x29   : > { %p1757_p10 = pnand %p1756_p5, %p1750_p11 }
  0x2b   : > { %1760 = shalt.err (!%p1757_p10)
}
  0x2c   : > { %s1863_s27 = smov 64   ;;  %s1864_s28 = smov 4  }
  0x2d   : > { %1636 = dma.hbm_to_vmem [thread:$0]  (!%p1976_p12), %s2280_s5, 1024, %s274_s23, [#allocation3], %s1863_s27, %s1863_s27, %s1864_s28  }
  0x2e   : > { %s1761_s22 = scalar_lea.hbm %s2282_s7, 1024 }
  0x2f   : > { %p1762_p13 = scmp.ne.s32.totalorder %s2282_s7, %s1761_s22  ;;  %p1768_p9 = scmp.lt.u32.totalorder %s1761_s22, %s2282_s7 }
  0x31   : > { %p1764_p5 = pnand %p1762_p13, %p1735_p0 }
  0x33   : > { %p1765_p6 = pneg %p1764_p5 }
  0x35   : > { %p1770_p10 = pnand %p1768_p9, %p1765_p6 }
  0x37   : > { %1773 = shalt.err (!%p1770_p10)
}
  0x38   : > { %s1774_s23 = scalar_lea.vmem %s1980_s26, 1024  ;;  %p1782_p4 = scmp.lt.s32.totalorder %s1980_s26, %s1980_s26 }
  0x39   : > { %p1775_p1 = scmp.ne.s32.totalorder %s1980_s26, %s1774_s23  ;;  %p1783_p7 = scmp.lt.s32.totalorder %s1774_s23, %s1774_s23 }
  0x3b   : > { %p1777_p2 = pnand %p1775_p1, %p1735_p0  ;;  %p1784_p8 = por %p1783_p7, %p1782_p4 }
  0x3d   : > { %p1778_p3 = pneg %p1777_p2 }
  0x3f   : > { %p1785_p11 = pnand %p1784_p8, %p1778_p3 }
  0x41   : > { %1788 = shalt.err (!%p1785_p11)
}
  0x42   : > { %1639 = dma.hbm_to_vmem [thread:$0]  (!%p1976_p12), %s2282_s7, 1024, %s1980_s26, [#allocation6], %s1863_s27, %s1863_s27, %s1864_s28  }
  0x43   : > { %p2298_p13 = scmp.ne.s32.totalorder %s2296_s21, 0 }
  0x44   : > { %p2299_p5 = scmp.eq.s32.totalorder (!%p2298_p13), %s1940_s13, 0 }
  0x45   : > { %317 = sbr.rel (%p2298_p13) target bundleno = 1045 (0x415), region = 56 }
  0x4c   : > { %1834 = dma.done.wait (%p2299_p5), [#allocation3], 1024   ;;  %p2300_p0 = pmov %p2299_p5 }
  0x4e   : > { %1836 = vsyncadd (%p2300_p0), [#allocation3], 4294966272  ;;  %p2301_p6 = pmov %p2300_p0 }
  0x4f   : > { %p2302_p9 = pmov %p2300_p0 }
  0x50   : > { %1838 = dma.done.wait (%p2301_p6), [#allocation6], 1024  }
  0x51   : > { %1840 = vsyncadd (%p2302_p9), [#allocation6], 4294966272  ;;  %s1383_s18 = sshll.u32 %s1940_s13, 4  ;;  %v1865_v0 = vmov 0   ;;  %v1688_v1 = vld [vmem:[%s2276_s1 + $0x4] ss:$8 sps:$4 sm:$0xff]   ;;  %v386_v34 = vlaneseq }
  0x52   : > { %515 = vmatprep.mubr.bf16.mxu0 %v1865_v0  ;;  %p358_p12 = scmp.lt.s32.totalorder %s1383_s18, 31  ;;  %v1690_v2 = vld [vmem:[%s2276_s1] ss:$8 sps:$4 sm:$0xff]   ;;  %v383_v3 = vld [vmem:[%s2276_s1 + $0x10] sm:$0xff]  ;;  %vm476_vm0 = vcmask 1043456   ;;  %483 = vmatprep.subr.bf16.mxu0 %v1688_v1  ;;  %vm451_vm1 = vcmask 195584  }
  0x53   : > { %v1396_v4 = vcombine.high %v383_v3, %v383_v3  ;;  %v1395_v5 = vcombine.low %v383_v3, %v383_v3  ;;  %484 = vmatpush1.bf16.msra.mxu0 %v1690_v2  ;;  %v1701_v8 = vld [vmem:[%s2278_s3 + $0x40] sm:$0xff]   ;;  %v1703_v11 = vld [vmem:[%s2278_s3 + $0x48] sm:$0xff]   ;;  %v1705_v13 = vld [vmem:[%s2278_s3 + $0x50] sm:$0xff]   ;;  %v387_v35 = vshrl.u32 %v386_v34, 7  ;;  %s354_s28 = sand.u32 1, %s1851_s10   ;;  %s1446_s25 = sshll.u32 %s1940_s13, 11 }
  0x54   : > { %s2311_s18 = smov (!%p358_p12, %s1383_s18), 31  ;;  %v1702_v9 = vld [vmem:[%s2278_s3] sm:$0xff]   ;;  %1447 = vmatprep.subr.bf16.mxu1 %v1701_v8  ;;  %v1704_v12 = vld [vmem:[%s2278_s3 + $0x8] sm:$0xff]   ;;  %v1706_v14 = vld [vmem:[%s2278_s3 + $0x10] sm:$0xff]   ;;  %s1382_s14 = sshll.u32 %s354_s28, 7 }
  0x55   : > { %s1384_s21 = sshll.u32 %s2311_s18, 2  ;;  %1397 = vmatprep.subr.msk.bf16.mxu0 %vm476_vm0, %v1396_v4  ;;  %v478_v6 = vsel %vm476_vm0, %v1395_v5, 0  ;;  %1448 = vmatpush3.bf16.msra.mxu1 %v1702_v9  ;;  %v1707_v15 = vld [vmem:[%s2278_s3 + $0x58] sm:$0xff]   ;;  %v1709_v18 = vld [vmem:[%s2278_s3 + $0x60] sm:$0xff]   ;;  %v1711_v20 = vld [vmem:[%s2278_s3 + $0x68] sm:$0xff]   ;;  %v388_v36 = vsub.s32 0, %v387_v35  ;;  %s2225_s15 = scalar_lea.hbm %s2284_s9, %s1446_s25 }
  0x56   : > { %s2046_s29 = scalar_lea.vmem %s2275_s0, %s1384_s21  ;;  %1449 = vmatprep.subr.bf16.mxu1 %v1703_v11  ;;  %v1708_v17 = vld [vmem:[%s2278_s3 + $0x18] sm:$0xff]   ;;  %v1710_v19 = vld [vmem:[%s2278_s3 + $0x20] sm:$0xff]   ;;  %v1712_v26 = vld [vmem:[%s2278_s3 + $0x28] sm:$0xff]   ;;  %v392_v38 = vsub.s32 1, %v387_v35  ;;  %s2205_s22 = scalar_lea.vmem [#allocation7], %s1382_s14 }
  0x57   : > { %v1693_v7 = vld [vmem:[%s2046_s29] sm:$0xff]   ;;  %486 = vmatpush1.bf16.msra.mxu0 %v478_v6  ;;  %v1694_v10 = vld [vmem:[%s2046_s29 + $0x8] sm:$0xff]   ;;  %v1695_v16 = vld [vmem:[%s2046_s29 + $0x10] sm:$0xff]   ;;  %s1290_s23 = sshll.u32 %s2205_s22, 4  ;;  %s2234_s13 = scalar_lea.sflag [#allocation4], %s354_s28  ;;  %s2227_s23 = int_to_ptr.vmem [resolvable:$true] %s1290_s23 }
  0x58   : > { %v1696_v21 = vld [vmem:[%s2046_s29 + $0x18] sm:$0xff]   ;;  %v1697_v22 = vld [vmem:[%s2046_s29 + $0x20] sm:$0xff]   ;;  %v1698_v23 = vld [vmem:[%s2046_s29 + $0x28] sm:$0xff]   ;;  %s1789_s18 = scalar_lea.vmem %s2227_s23, 2048  ;;  %p2303_p1 = scmp.ne.s32.totalorder %s2294_s19, 0 }
  0x59   : > { %1450 = vmatpush3.bf16.msra.mxu1 %v1704_v12  ;;  %v1699_v24 = vld [vmem:[%s2046_s29 + $0x30] sm:$0xff]   ;;  %v1700_v25 = vld [vmem:[%s2046_s29 + $0x38] sm:$0xff]   ;;  %v1717_v31 = vld [vmem:[#allocation2] sm:$0xff]   ;;  %p1790_p10 = scmp.ne.s32.totalorder %s2227_s23, %s1789_s18  ;;  %s1866_s21 = smov [#allocation7]  }
  0x5a   : > { %1398 = vmatmul.mubr.msk.bf16.vlgmr.msra.gmra.mrb[0].mxu0 %vm451_vm1, %v1693_v7  ;;  %1451 = vmatprep.subr.bf16.mxu1 %v1705_v13  ;;  %v1713_v27 = vld [vmem:[%s2278_s3 + $0x70] sm:$0xff]   ;;  %v1715_v29 = vld [vmem:[%s2278_s3 + $0x78] sm:$0xff]   ;;  %v1718_v32 = vld [vmem:[#allocation2 + $0x8] sm:$0xff]   ;;  %s1793_s24 = sshll.u32 %s1866_s21, 4  ;;  %s1794_s24 = int_to_ptr.vmem [resolvable:$false] %s1793_s24 }
  0x5b   : > { %525 = vmatprep.mubr.bf16.mxu0 %v1865_v0  ;;  %v1714_v28 = vld [vmem:[%s2278_s3 + $0x30] sm:$0xff]   ;;  %v1716_v30 = vld [vmem:[%s2278_s3 + $0x38] sm:$0xff]   ;;  %1543 = vmatprep.subr.bf16.mxu0 %v1717_v31  ;;  %v384_v37 = vld [vmem:[%s2277_s2] sm:$0x3]  ;;  %p1791_p2 = pnand %p1790_p10, %p2303_p1  ;;  %s1795_s26 = scalar_lea.vmem %s1794_s24, 4096 }
  0x5c   : > { %1544 = vmatpush3.bf16.msra.mxu0 %v1717_v31  ;;  %v1719_v33 = vld [vmem:[#allocation2 + $0x10] sm:$0xff]   ;;  %v2121_v39 = vrot.slane %v384_v37, %v388_v36  ;;  %v2123_v40 = vrot.slane %v384_v37, %v392_v38  ;;  %p1796_p4 = scmp.lt.s32.totalorder %s2227_s23, %s1794_s24  ;;  %p1797_p7 = scmp.lt.s32.totalorder %s1795_s26, %s1789_s18 }
  0x5d   : > { %1452 = vmatpush3.bf16.msra.mxu1 %v1706_v14  ;;  %1545 = vmatprep.subr.bf16.mxu0 %v1718_v32  ;;  %p1792_p3 = pneg %p1791_p2 }
  0x5e   : > { %1453 = vmatprep.subr.bf16.mxu1 %v1707_v15  ;;  %p1798_p8 = por %p1797_p7, %p1796_p4 }
  0x60   : > { %1546 = vmatpush3.bf16.msra.mxu0 %v1718_v32  ;;  %p1799_p11 = pnand %p1798_p8, %p1792_p3 }
  0x61   : > { %1454 = vmatpush3.bf16.msra.mxu1 %v1708_v17  ;;  %1547 = vmatprep.subr.bf16.mxu0 %v1719_v33 }
  0x62   : > { %1399 = vmatmul.mubr.msk.bf16.gmra.mrb[4].mxu0 %vm451_vm1, %v1694_v10  ;;  %1455 = vmatprep.subr.bf16.mxu1 %v1709_v18 }
  0x63   : > { %535 = vmatprep.mubr.bf16.mxu0 %v1865_v0 }
  0x64   : > { %1548 = vmatpush3.bf16.msra.mxu0 %v1719_v33 }
  0x65   : > { %1456 = vmatpush3.bf16.msra.mxu1 %v1710_v19 }
  0x66   : > { %1457 = vmatprep.subr.bf16.mxu1 %v1711_v20 }
  0x69   : > { %1458 = vmatpush3.bf16.msra.mxu1 %v1712_v26 }
  0x6a   : > { %1400 = vmatmul.mubr.msk.bf16.gmra.mrb[8].mxu0 %vm451_vm1, %v1695_v16  ;;  %1459 = vmatprep.subr.bf16.mxu1 %v1713_v27 }
  0x6b   : > { %545 = vmatprep.mubr.bf16.mxu0 %v1865_v0 }
  0x6d   : > { %1460 = vmatpush3.bf16.msra.mxu1 %v1714_v28 }
  0x6e   : > { %1461 = vmatprep.subr.bf16.mxu1 %v1715_v29 }
  0x71   : > { %1462 = vmatpush3.bf16.msra.mxu1 %v1716_v30 }
  0x72   : > { %1401 = vmatmul.mubr.msk.bf16.gmra.mrb[12].mxu0 %vm451_vm1, %v1696_v21 }
  0x73   : > { %555 = vmatprep.mubr.bf16.mxu0 %v1865_v0 }
  0x7a   : > { %1402 = vmatmul.mubr.msk.bf16.gmra.mrb[16].mxu0 %vm451_vm1, %v1697_v22 }
  0x7b   : > { %565 = vmatprep.mubr.bf16.mxu0 %v1865_v0 }
  0x82   : > { %1403 = vmatmul.mubr.msk.bf16.gmra.mrb[20].mxu0 %vm451_vm1, %v1698_v23 }
  0x83   : > { %575 = vmatprep.mubr.bf16.mxu0 %v1865_v0 }
  0x8a   : > { %1404 = vmatmul.mubr.msk.bf16.gmra.mrb[24].mxu0 %vm451_vm1, %v1699_v24 }
  0x8b   : > { %585 = vmatprep.mubr.bf16.mxu0 %v1865_v0 }
  0x92   : > { %1405 = vmatmul.mubr.msk.bf16.gmra.mrb[28].mxu0 %vm451_vm1, %v1700_v25 }
 0x12d   : > { %v517_v41 = vpop.f32.mrb[0].mxu0 }
 0x12e   : > { %v518_v42 = vadd.f32 %v517_v41, %v2121_v39  ;;  %v519_v43 = vpop.f32.mrb[1].mxu0 }
 0x12f   : > { %v520_v44 = vadd.f32 %v519_v43, %v2123_v40  ;;  %v521_v45 = vpop.f32.mrb[2].mxu0 }
 0x130   : > { %v522_v46 = vadd.f32 %v521_v45, %v2121_v39  ;;  %v523_v47 = vpop.f32.mrb[3].mxu0  ;;  %v596_v49 = vmax.f32 %v518_v42, 0.0 }
 0x131   : > { %v524_v48 = vadd.f32 %v523_v47, %v2123_v40  ;;  %v597_v51 = vmax.f32 %v520_v44, 0.0 }
 0x132   : > { %v598_v50 = vmax.f32 %v522_v46, 0.0 }
 0x133   : > { %v599_v52 = vmax.f32 %v524_v48, 0.0 }
 0x134   : > { %v628_v53 = vpack.c.bf16 %v598_v50, %v596_v49 }
 0x135   : > { %v527_v54 = vpop.f32.mrb[4].mxu0  ;;  %v629_v55 = vpack.c.bf16 %v599_v52, %v597_v51 }
 0x136   : > { %v528_v56 = vadd.f32 %v527_v54, %v2121_v39  ;;  %v529_v57 = vpop.f32.mrb[5].mxu0 }
 0x137   : > { %v530_v58 = vadd.f32 %v529_v57, %v2123_v40  ;;  %v531_v59 = vpop.f32.mrb[6].mxu0  ;;  %811 = vmatprep.mubr.bf16.mxu1 %v629_v55 }
 0x138   : > { %v532_v60 = vadd.f32 %v531_v59, %v2121_v39  ;;  %v533_v61 = vpop.f32.mrb[7].mxu0  ;;  %812 = vmatmul.mubr.bf16.vlgmr.msra.gmra.mrb[0].mxu1 %v628_v53  ;;  %v600_v63 = vmax.f32 %v528_v56, 0.0 }
 0x139   : > { %v534_v62 = vadd.f32 %v533_v61, %v2123_v40  ;;  %v601_v1 = vmax.f32 %v530_v58, 0.0 }
 0x13a   : > { %v602_v0 = vmax.f32 %v532_v60, 0.0 }
 0x13b   : > { %v603_v2 = vmax.f32 %v534_v62, 0.0 }
 0x13c   : > { %v630_v3 = vpack.c.bf16 %v602_v0, %v600_v63 }
 0x13d   : > { %v631_v4 = vpack.c.bf16 %v603_v2, %v601_v1  ;;  %v537_v5 = vpop.f32.mrb[8].mxu0 }
 0x13e   : > { %v538_v6 = vadd.f32 %v537_v5, %v2121_v39  ;;  %v539_v7 = vpop.f32.mrb[9].mxu0 }
 0x13f   : > { %v540_v8 = vadd.f32 %v539_v7, %v2123_v40  ;;  %v541_v9 = vpop.f32.mrb[10].mxu0  ;;  %819 = vmatprep.mubr.bf16.mxu1 %v631_v4 }
 0x140   : > { %v542_v10 = vadd.f32 %v541_v9, %v2121_v39  ;;  %v543_v11 = vpop.f32.mrb[11].mxu0  ;;  %820 = vmatmul.mubr.bf16.gmra.mrb[4].mxu1 %v630_v3  ;;  %v604_v13 = vmax.f32 %v538_v6, 0.0 }
 0x141   : > { %v544_v12 = vadd.f32 %v543_v11, %v2123_v40  ;;  %v605_v15 = vmax.f32 %v540_v8, 0.0 }
 0x142   : > { %v606_v14 = vmax.f32 %v542_v10, 0.0 }
 0x143   : > { %v607_v16 = vmax.f32 %v544_v12, 0.0 }
 0x144   : > { %v632_v17 = vpack.c.bf16 %v606_v14, %v604_v13 }
 0x145   : > { %v633_v18 = vpack.c.bf16 %v607_v16, %v605_v15  ;;  %v547_v19 = vpop.f32.mrb[12].mxu0 }
 0x146   : > { %v548_v20 = vadd.f32 %v547_v19, %v2121_v39  ;;  %v549_v21 = vpop.f32.mrb[13].mxu0 }
 0x147   : > { %v550_v22 = vadd.f32 %v549_v21, %v2123_v40  ;;  %v551_v23 = vpop.f32.mrb[14].mxu0  ;;  %827 = vmatprep.mubr.bf16.mxu1 %v633_v18 }
 0x148   : > { %v552_v24 = vadd.f32 %v551_v23, %v2121_v39  ;;  %v553_v25 = vpop.f32.mrb[15].mxu0  ;;  %828 = vmatmul.mubr.bf16.gmra.mrb[8].mxu1 %v632_v17  ;;  %v608_v27 = vmax.f32 %v548_v20, 0.0 }
 0x149   : > { %v554_v26 = vadd.f32 %v553_v25, %v2123_v40  ;;  %v609_v29 = vmax.f32 %v550_v22, 0.0 }
 0x14a   : > { %v610_v28 = vmax.f32 %v552_v24, 0.0 }
 0x14b   : > { %v611_v30 = vmax.f32 %v554_v26, 0.0 }
 0x14c   : > { %v634_v31 = vpack.c.bf16 %v610_v28, %v608_v27  ;;  %v1720_v27 = vld [vmem:[#allocation2 + $0x18] sm:$0xff]   ;;  %v1721_v28 = vld [vmem:[#allocation2 + $0x20] sm:$0xff]  }
 0x14d   : > { %v635_v32 = vpack.c.bf16 %v611_v30, %v609_v29  ;;  %v557_v33 = vpop.f32.mrb[16].mxu0  ;;  %1549 = vmatprep.subr.bf16.mxu0 %v1720_v27  ;;  %v1722_v29 = vld [vmem:[#allocation2 + $0x28] sm:$0xff]   ;;  %v1725_v30 = vld [vmem:[#allocation5] sm:$0xff]  }
 0x14e   : > { %v558_v34 = vadd.f32 %v557_v33, %v2121_v39  ;;  %v559_v35 = vpop.f32.mrb[17].mxu0  ;;  %1550 = vmatpush3.bf16.msra.mxu0 %v1720_v27  ;;  %1607 = vmatprep.subr.bf16.mxu1 %v1725_v30  ;;  %v2157_v33 = vld [vmem:[#allocation5 + $0x18] sm:$0xff]  }
 0x14f   : > { %v560_v36 = vadd.f32 %v559_v35, %v2123_v40  ;;  %v561_v37 = vpop.f32.mrb[18].mxu0  ;;  %835 = vmatprep.mubr.bf16.mxu1 %v635_v32  ;;  %1551 = vmatprep.subr.bf16.mxu0 %v1721_v28  ;;  %v1727_v32 = vld [vmem:[#allocation5 + $0x10] sm:$0xff]   ;;  %v2164_v35 = vld [vmem:[#allocation5 + $0x28] sm:$0xff]  }
 0x150   : > { %v562_v38 = vadd.f32 %v561_v37, %v2121_v39  ;;  %v563_v41 = vpop.f32.mrb[19].mxu0  ;;  %836 = vmatmul.mubr.bf16.gmra.mrb[12].mxu1 %v634_v31  ;;  %v612_v43 = vmax.f32 %v558_v34, 0.0  ;;  %v1726_v31 = vld [vmem:[#allocation5 + $0x8] sm:$0xff]   ;;  %v2160_v34 = vld [vmem:[#allocation5 + $0x20] sm:$0xff]  }
 0x151   : > { %v564_v42 = vadd.f32 %v563_v41, %v2123_v40  ;;  %v613_v45 = vmax.f32 %v560_v36, 0.0  ;;  %1615 = vmatpush3.bf16.msra.mxu1 %v1725_v30  ;;  %v2172_v37 = vld [vmem:[%s2279_s4] ss:$0 sm:$0xff] }
 0x152   : > { %v614_v44 = vmax.f32 %v562_v38, 0.0  ;;  %1552 = vmatpush3.bf16.msra.mxu0 %v1721_v28  ;;  %1608 = vmatprep.subr.bf16.mxu1 %v1726_v31 }
 0x153   : > { %v615_v46 = vmax.f32 %v564_v42, 0.0  ;;  %1553 = vmatprep.subr.bf16.mxu0 %v1722_v29 }
 0x154   : > { %v636_v47 = vpack.c.bf16 %v614_v44, %v612_v43 }
 0x155   : > { %v637_v48 = vpack.c.bf16 %v615_v46, %v613_v45  ;;  %v567_v49 = vpop.f32.mrb[20].mxu0  ;;  %1616 = vmatpush3.bf16.msra.mxu1 %v1726_v31 }
 0x156   : > { %v568_v50 = vadd.f32 %v567_v49, %v2121_v39  ;;  %v569_v51 = vpop.f32.mrb[21].mxu0  ;;  %1554 = vmatpush3.bf16.msra.mxu0 %v1722_v29  ;;  %1609 = vmatprep.subr.bf16.mxu1 %v1727_v32 }
 0x157   : > { %v570_v52 = vadd.f32 %v569_v51, %v2123_v40  ;;  %v571_v53 = vpop.f32.mrb[22].mxu0  ;;  %843 = vmatprep.mubr.bf16.mxu1 %v637_v48 }
 0x158   : > { %v572_v54 = vadd.f32 %v571_v53, %v2121_v39  ;;  %v573_v55 = vpop.f32.mrb[23].mxu0  ;;  %844 = vmatmul.mubr.bf16.gmra.mrb[16].mxu1 %v636_v47  ;;  %v616_v57 = vmax.f32 %v568_v50, 0.0 }
 0x159   : > { %v574_v56 = vadd.f32 %v573_v55, %v2123_v40  ;;  %v617_v59 = vmax.f32 %v570_v52, 0.0  ;;  %1617 = vmatpush3.bf16.msra.mxu1 %v1727_v32 }
 0x15a   : > { %v618_v58 = vmax.f32 %v572_v54, 0.0  ;;  %1610 = vmatprep.subr.bf16.mxu1 %v2157_v33 }
 0x15b   : > { %v619_v60 = vmax.f32 %v574_v56, 0.0 }
 0x15c   : > { %v638_v61 = vpack.c.bf16 %v618_v58, %v616_v57 }
 0x15d   : > { %v639_v62 = vpack.c.bf16 %v619_v60, %v617_v59  ;;  %v577_v63 = vpop.f32.mrb[24].mxu0  ;;  %1618 = vmatpush3.bf16.msra.mxu1 %v2157_v33 }
 0x15e   : > { %v578_v0 = vadd.f32 %v577_v63, %v2121_v39  ;;  %v579_v1 = vpop.f32.mrb[25].mxu0  ;;  %1611 = vmatprep.subr.bf16.mxu1 %v2160_v34 }
 0x15f   : > { %v580_v2 = vadd.f32 %v579_v1, %v2123_v40  ;;  %v581_v3 = vpop.f32.mrb[26].mxu0  ;;  %851 = vmatprep.mubr.bf16.mxu1 %v639_v62 }
 0x160   : > { %v582_v4 = vadd.f32 %v581_v3, %v2121_v39  ;;  %v583_v5 = vpop.f32.mrb[27].mxu0  ;;  %852 = vmatmul.mubr.bf16.gmra.mrb[20].mxu1 %v638_v61  ;;  %v620_v7 = vmax.f32 %v578_v0, 0.0 }
 0x161   : > { %v584_v6 = vadd.f32 %v583_v5, %v2123_v40  ;;  %v621_v9 = vmax.f32 %v580_v2, 0.0  ;;  %1619 = vmatpush3.bf16.msra.mxu1 %v2160_v34 }
 0x162   : > { %v622_v8 = vmax.f32 %v582_v4, 0.0  ;;  %1612 = vmatprep.subr.bf16.mxu1 %v2164_v35 }
 0x163   : > { %v623_v10 = vmax.f32 %v584_v6, 0.0 }
 0x164   : > { %v640_v11 = vpack.c.bf16 %v622_v8, %v620_v7 }
 0x165   : > { %v641_v12 = vpack.c.bf16 %v623_v10, %v621_v9  ;;  %v587_v13 = vpop.f32.mrb[28].mxu0  ;;  %1620 = vmatpush3.bf16.msra.mxu1 %v2164_v35 }
 0x166   : > { %v588_v14 = vadd.f32 %v587_v13, %v2121_v39  ;;  %v589_v15 = vpop.f32.mrb[29].mxu0 }
 0x167   : > { %v590_v16 = vadd.f32 %v589_v15, %v2123_v40  ;;  %v591_v17 = vpop.f32.mrb[30].mxu0  ;;  %859 = vmatprep.mubr.bf16.mxu1 %v641_v12 }
 0x168   : > { %v592_v18 = vadd.f32 %v591_v17, %v2121_v39  ;;  %v593_v19 = vpop.f32.mrb[31].mxu0  ;;  %860 = vmatmul.mubr.bf16.gmra.mrb[24].mxu1 %v640_v11  ;;  %v624_v21 = vmax.f32 %v588_v14, 0.0  ;;  %v1723_v39 = vld [vmem:[#allocation2 + $0x30] sm:$0xff]  }
 0x169   : > { %v594_v20 = vadd.f32 %v593_v19, %v2123_v40  ;;  %v625_v23 = vmax.f32 %v590_v16, 0.0  ;;  %1555 = vmatprep.subr.bf16.mxu0 %v1723_v39  ;;  %v1724_v40 = vld [vmem:[#allocation2 + $0x38] sm:$0xff]  }
 0x16a   : > { %v626_v22 = vmax.f32 %v592_v18, 0.0  ;;  %1556 = vmatpush3.bf16.msra.mxu0 %v1723_v39 }
 0x16b   : > { %v627_v24 = vmax.f32 %v594_v20, 0.0  ;;  %1557 = vmatprep.subr.bf16.mxu0 %v1724_v40 }
 0x16c   : > { %v642_v25 = vpack.c.bf16 %v626_v22, %v624_v21 }
 0x16d   : > { %v643_v26 = vpack.c.bf16 %v627_v24, %v625_v23 }
 0x16e   : > { %1558 = vmatpush3.bf16.msra.mxu0 %v1724_v40 }
 0x16f   : > { %867 = vmatprep.mubr.bf16.mxu1 %v643_v26  ;;  %1575 = vmatprep.subr.bf16.mxu0 %v1725_v30 }
 0x170   : > { %868 = vmatmul.mubr.bf16.gmra.mrb[28].mxu1 %v642_v25 }
 0x20b   : > { %v1463_v36 = vpop.f32.mrb[0].mxu1 }
 0x20c   : > { %v1464_v38 = vpop.f32.mrb[1].mxu1 }
 0x20d   : > { %v1465_v41 = vadd.f32 %v1464_v38, %v1463_v36  ;;  %v1466_v42 = vpop.f32.mrb[2].mxu1 }
 0x20e   : > { %v1467_v43 = vpop.f32.mrb[3].mxu1 }
 0x20f   : > { %v814_v44 = vadd.f32 %v1465_v41, %v2172_v37  ;;  %v1468_v45 = vadd.f32 %v1467_v43, %v1466_v42 }
 0x211   : > { %v817_v46 = vadd.f32 %v1468_v45, %v2172_v37  ;;  %v876_v47 = vmax.f32 %v814_v44, 0.0 }
 0x213   : > { %v877_v48 = vmax.f32 %v817_v46, 0.0  ;;  %v1469_v49 = vpop.f32.mrb[4].mxu1 }
 0x214   : > { %v1470_v50 = vpop.f32.mrb[5].mxu1 }
 0x215   : > { %v1471_v51 = vadd.f32 %v1470_v50, %v1469_v49  ;;  %v1472_v52 = vpop.f32.mrb[6].mxu1  ;;  %v892_v53 = vpack.c.bf16 %v877_v48, %v876_v47 }
 0x216   : > { %v1473_v54 = vpop.f32.mrb[7].mxu1 }
 0x217   : > { %v822_v55 = vadd.f32 %v1471_v51, %v2172_v37  ;;  %v1474_v56 = vadd.f32 %v1473_v54, %v1472_v52  ;;  %1559 = vmatprep.mubr.bf16.mxu0 %v892_v53 }
 0x219   : > { %v825_v57 = vadd.f32 %v1474_v56, %v2172_v37  ;;  %v878_v58 = vmax.f32 %v822_v55, 0.0 }
 0x21b   : > { %v879_v59 = vmax.f32 %v825_v57, 0.0  ;;  %v1475_v60 = vpop.f32.mrb[8].mxu1 }
 0x21c   : > { %v1476_v61 = vpop.f32.mrb[9].mxu1 }
 0x21d   : > { %v893_v62 = vpack.c.bf16 %v879_v59, %v878_v58  ;;  %v1477_v63 = vadd.f32 %v1476_v61, %v1475_v60  ;;  %v1478_v0 = vpop.f32.mrb[10].mxu1 }
 0x21e   : > { %v1479_v1 = vpop.f32.mrb[11].mxu1 }
 0x21f   : > { %v830_v2 = vadd.f32 %v1477_v63, %v2172_v37  ;;  %v1480_v3 = vadd.f32 %v1479_v1, %v1478_v0  ;;  %1560 = vmatmul.mubr.bf16.vlgmr.msra.gmra.mrb[32].mxu0 %v893_v62  ;;  %v1731_v0 = vld [vmem:[#allocation5 + $0x30] sm:$0xff]   ;;  %v1732_v1 = vld [vmem:[#allocation5 + $0x38] sm:$0xff]  }
 0x220   : > { %1576 = vmatpush3.bf16.msra.mxu0 %v1725_v30  ;;  %1613 = vmatprep.subr.bf16.mxu1 %v1731_v0 }
 0x221   : > { %v833_v4 = vadd.f32 %v1480_v3, %v2172_v37  ;;  %1577 = vmatprep.subr.bf16.mxu0 %v1726_v31  ;;  %v880_v5 = vmax.f32 %v830_v2, 0.0  ;;  %1621 = vmatpush3.bf16.msra.mxu1 %v1731_v0  ;;  %v1423_v2 = vld [vmem:[%s2281_s6] ss:$0 sm:$0xff] }
 0x222   : > { %1614 = vmatprep.subr.bf16.mxu1 %v1732_v1 }
 0x223   : > { %v881_v6 = vmax.f32 %v833_v4, 0.0  ;;  %v1481_v7 = vpop.f32.mrb[12].mxu1 }
 0x224   : > { %v1482_v8 = vpop.f32.mrb[13].mxu1  ;;  %1578 = vmatpush3.bf16.msra.mxu0 %v1726_v31 }
 0x225   : > { %v1483_v9 = vadd.f32 %v1482_v8, %v1481_v7  ;;  %v1484_v10 = vpop.f32.mrb[14].mxu1  ;;  %v894_v11 = vpack.c.bf16 %v881_v6, %v880_v5  ;;  %1579 = vmatprep.subr.bf16.mxu0 %v1727_v32  ;;  %1622 = vmatpush3.bf16.msra.mxu1 %v1732_v1 }
 0x226   : > { %v1485_v12 = vpop.f32.mrb[15].mxu1 }
 0x227   : > { %v838_v13 = vadd.f32 %v1483_v9, %v2172_v37  ;;  %v1486_v14 = vadd.f32 %v1485_v12, %v1484_v10  ;;  %1563 = vmatprep.mubr.bf16.mxu0 %v894_v11 }
 0x228   : > { %1580 = vmatpush3.bf16.msra.mxu0 %v1727_v32 }
 0x229   : > { %v841_v15 = vadd.f32 %v1486_v14, %v2172_v37  ;;  %1581 = vmatprep.subr.bf16.mxu0 %v2157_v33  ;;  %v882_v16 = vmax.f32 %v838_v13, 0.0 }
 0x22b   : > { %v883_v17 = vmax.f32 %v841_v15, 0.0  ;;  %v1487_v18 = vpop.f32.mrb[16].mxu1 }
 0x22c   : > { %v1488_v19 = vpop.f32.mrb[17].mxu1  ;;  %1582 = vmatpush3.bf16.msra.mxu0 %v2157_v33 }
 0x22d   : > { %v1489_v20 = vadd.f32 %v1488_v19, %v1487_v18  ;;  %v1490_v21 = vpop.f32.mrb[18].mxu1  ;;  %v895_v22 = vpack.c.bf16 %v883_v17, %v882_v16  ;;  %1583 = vmatprep.subr.bf16.mxu0 %v2160_v34 }
 0x22e   : > { %v1491_v23 = vpop.f32.mrb[19].mxu1 }
 0x22f   : > { %v846_v24 = vadd.f32 %v1489_v20, %v2172_v37  ;;  %v1492_v25 = vadd.f32 %v1491_v23, %v1490_v21  ;;  %1564 = vmatmul.mubr.bf16.gmra.mrb[36].mxu0 %v895_v22 }
 0x230   : > { %1584 = vmatpush3.bf16.msra.mxu0 %v2160_v34 }
 0x231   : > { %v849_v26 = vadd.f32 %v1492_v25, %v2172_v37  ;;  %1585 = vmatprep.subr.bf16.mxu0 %v2164_v35  ;;  %v884_v27 = vmax.f32 %v846_v24, 0.0 }
 0x233   : > { %v885_v28 = vmax.f32 %v849_v26, 0.0  ;;  %v1493_v29 = vpop.f32.mrb[20].mxu1 }
 0x234   : > { %v1494_v39 = vpop.f32.mrb[21].mxu1  ;;  %1586 = vmatpush3.bf16.msra.mxu0 %v2164_v35 }
 0x235   : > { %v1495_v40 = vadd.f32 %v1494_v39, %v1493_v29  ;;  %v1496_v30 = vpop.f32.mrb[22].mxu1  ;;  %v896_v31 = vpack.c.bf16 %v885_v28, %v884_v27  ;;  %1587 = vmatprep.subr.bf16.mxu0 %v1731_v0 }
 0x236   : > { %v1497_v32 = vpop.f32.mrb[23].mxu1 }
 0x237   : > { %v854_v33 = vadd.f32 %v1495_v40, %v2172_v37  ;;  %v1498_v36 = vadd.f32 %v1497_v32, %v1496_v30  ;;  %1567 = vmatprep.mubr.bf16.mxu0 %v896_v31 }
 0x238   : > { %1588 = vmatpush3.bf16.msra.mxu0 %v1731_v0 }
 0x239   : > { %v857_v34 = vadd.f32 %v1498_v36, %v2172_v37  ;;  %v886_v38 = vmax.f32 %v854_v33, 0.0  ;;  %1589 = vmatprep.subr.bf16.mxu0 %v1732_v1 }
 0x23b   : > { %v887_v41 = vmax.f32 %v857_v34, 0.0  ;;  %v1499_v42 = vpop.f32.mrb[24].mxu1 }
 0x23c   : > { %v1500_v43 = vpop.f32.mrb[25].mxu1  ;;  %1590 = vmatpush3.bf16.msra.mxu0 %v1732_v1 }
 0x23d   : > { %v1501_v44 = vadd.f32 %v1500_v43, %v1499_v42  ;;  %v1502_v45 = vpop.f32.mrb[26].mxu1  ;;  %v897_v46 = vpack.c.bf16 %v887_v41, %v886_v38 }
 0x23e   : > { %v1503_v47 = vpop.f32.mrb[27].mxu1 }
 0x23f   : > { %v862_v35 = vadd.f32 %v1501_v44, %v2172_v37  ;;  %v1504_v48 = vadd.f32 %v1503_v47, %v1502_v45  ;;  %1568 = vmatmul.mubr.bf16.gmra.mrb[40].mxu0 %v897_v46 }
 0x241   : > { %v865_v49 = vadd.f32 %v1504_v48, %v2172_v37  ;;  %v888_v50 = vmax.f32 %v862_v35, 0.0 }
 0x243   : > { %v889_v51 = vmax.f32 %v865_v49, 0.0  ;;  %v1505_v52 = vpop.f32.mrb[28].mxu1 }
 0x244   : > { %v1506_v53 = vpop.f32.mrb[29].mxu1 }
 0x245   : > { %v1507_v54 = vadd.f32 %v1506_v53, %v1505_v52  ;;  %v1508_v55 = vpop.f32.mrb[30].mxu1  ;;  %v898_v56 = vpack.c.bf16 %v889_v51, %v888_v50 }
 0x246   : > { %v1509_v57 = vpop.f32.mrb[31].mxu1 }
 0x247   : > { %v870_v58 = vadd.f32 %v1507_v54, %v2172_v37  ;;  %v1510_v59 = vadd.f32 %v1509_v57, %v1508_v55  ;;  %1571 = vmatprep.mubr.bf16.mxu0 %v898_v56 }
 0x249   : > { %v873_v60 = vadd.f32 %v1510_v59, %v2172_v37  ;;  %v890_v61 = vmax.f32 %v870_v58, 0.0  ;;  %v1432_v59 = vld [vmem:[%s2283_s8] ss:$0 sm:$0xff] }
 0x24b   : > { %v891_v62 = vmax.f32 %v873_v60, 0.0 }
 0x24d   : > { %v899_v63 = vpack.c.bf16 %v891_v62, %v890_v61 }
 0x24f   : > { %1572 = vmatmul.mubr.bf16.gmra.mrb[44].mxu0 %v899_v63 }
 0x2f2   : > { %v1561_v3 = vpop.f32.mrb[32].mxu0 }
 0x2f3   : > { %v1014_v37 = vadd.f32 %v1561_v3, %v1423_v2  ;;  %v1005_v4 = vpop.f32.mrb[33].mxu0 }
 0x2f4   : > { %v1006_v5 = vadd.f32 %v1423_v2, %v1005_v4  ;;  %v1562_v6 = vpop.f32.mrb[34].mxu0 }
 0x2f5   : > { %v1017_v7 = vadd.f32 %v1562_v6, %v1423_v2  ;;  %v1008_v8 = vpop.f32.mrb[35].mxu0  ;;  %v1070_v10 = vmax.f32 %v1014_v37, 0.0 }
 0x2f6   : > { %v1009_v9 = vadd.f32 %v1423_v2, %v1008_v8  ;;  %v1068_v12 = vmax.f32 %v1006_v5, 0.0 }
 0x2f7   : > { %v1071_v11 = vmax.f32 %v1017_v7, 0.0 }
 0x2f8   : > { %v1069_v13 = vmax.f32 %v1009_v9, 0.0 }
 0x2f9   : > { %v1085_v14 = vpack.c.bf16 %v1071_v11, %v1070_v10 }
 0x2fa   : > { %v1084_v15 = vpack.c.bf16 %v1069_v13, %v1068_v12 }
 0x2fc   : > { %1591 = vmatprep.mubr.bf16.mxu0 %v1084_v15 }
 0x2fd   : > { %1592 = vmatmul.mubr.bf16.vlgmr.msra.gmra.mrb[48].mxu0 %v1085_v14 }
 0x302   : > { %v1565_v16 = vpop.f32.mrb[36].mxu0 }
 0x303   : > { %v1030_v17 = vadd.f32 %v1565_v16, %v1423_v2  ;;  %v1021_v18 = vpop.f32.mrb[37].mxu0 }
 0x304   : > { %v1022_v19 = vadd.f32 %v1423_v2, %v1021_v18  ;;  %v1566_v20 = vpop.f32.mrb[38].mxu0 }
 0x305   : > { %v1033_v21 = vadd.f32 %v1566_v20, %v1423_v2  ;;  %v1024_v22 = vpop.f32.mrb[39].mxu0  ;;  %v1074_v24 = vmax.f32 %v1030_v17, 0.0 }
 0x306   : > { %v1025_v23 = vadd.f32 %v1423_v2, %v1024_v22  ;;  %v1072_v26 = vmax.f32 %v1022_v19, 0.0 }
 0x307   : > { %v1075_v25 = vmax.f32 %v1033_v21, 0.0 }
 0x308   : > { %v1073_v27 = vmax.f32 %v1025_v23, 0.0 }
 0x309   : > { %v1087_v28 = vpack.c.bf16 %v1075_v25, %v1074_v24 }
 0x30a   : > { %v1086_v29 = vpack.c.bf16 %v1073_v27, %v1072_v26 }
 0x30c   : > { %1595 = vmatprep.mubr.bf16.mxu1 %v1086_v29 }
 0x30d   : > { %1596 = vmatmul.mubr.bf16.vlgmr.msra.gmra.mrb[32].mxu1 %v1087_v28 }
 0x312   : > { %v1569_v39 = vpop.f32.mrb[40].mxu0 }
 0x313   : > { %v1046_v40 = vadd.f32 %v1569_v39, %v1423_v2  ;;  %v1037_v30 = vpop.f32.mrb[41].mxu0 }
 0x314   : > { %v1038_v31 = vadd.f32 %v1423_v2, %v1037_v30  ;;  %v1570_v32 = vpop.f32.mrb[42].mxu0 }
 0x315   : > { %v1049_v33 = vadd.f32 %v1570_v32, %v1423_v2  ;;  %v1040_v36 = vpop.f32.mrb[43].mxu0  ;;  %v1078_v38 = vmax.f32 %v1046_v40, 0.0 }
 0x316   : > { %v1041_v34 = vadd.f32 %v1423_v2, %v1040_v36  ;;  %v1076_v42 = vmax.f32 %v1038_v31, 0.0 }
 0x317   : > { %v1079_v41 = vmax.f32 %v1049_v33, 0.0 }
 0x318   : > { %v1077_v43 = vmax.f32 %v1041_v34, 0.0 }
 0x319   : > { %v1089_v44 = vpack.c.bf16 %v1079_v41, %v1078_v38 }
 0x31a   : > { %v1088_v45 = vpack.c.bf16 %v1077_v43, %v1076_v42 }
 0x31c   : > { %1599 = vmatprep.mubr.bf16.mxu1 %v1088_v45 }
 0x31d   : > { %1600 = vmatmul.mubr.bf16.gmra.mrb[36].mxu1 %v1089_v44 }
 0x322   : > { %v1573_v46 = vpop.f32.mrb[44].mxu0 }
 0x323   : > { %v1062_v47 = vadd.f32 %v1573_v46, %v1423_v2  ;;  %v1053_v35 = vpop.f32.mrb[45].mxu0 }
 0x324   : > { %v1054_v48 = vadd.f32 %v1423_v2, %v1053_v35  ;;  %v1574_v49 = vpop.f32.mrb[46].mxu0 }
 0x325   : > { %v1065_v50 = vadd.f32 %v1574_v49, %v1423_v2  ;;  %v1056_v51 = vpop.f32.mrb[47].mxu0  ;;  %v1082_v53 = vmax.f32 %v1062_v47, 0.0 }
 0x326   : > { %v1057_v52 = vadd.f32 %v1423_v2, %v1056_v51  ;;  %v1080_v55 = vmax.f32 %v1054_v48, 0.0 }
 0x327   : > { %v1083_v54 = vmax.f32 %v1065_v50, 0.0 }
 0x328   : > { %v1081_v56 = vmax.f32 %v1057_v52, 0.0 }
 0x329   : > { %v1091_v57 = vpack.c.bf16 %v1083_v54, %v1082_v53 }
 0x32a   : > { %v1090_v58 = vpack.c.bf16 %v1081_v56, %v1080_v55 }
 0x32c   : > { %1603 = vmatprep.mubr.bf16.mxu1 %v1090_v58 }
 0x32d   : > { %1604 = vmatmul.mubr.bf16.gmra.mrb[40].mxu1 %v1091_v57 }
 0x3d0   : > { %v1593_v60 = vpop.f32.mrb[48].mxu0 }
 0x3d1   : > { %v1206_v61 = vadd.f32 %v1593_v60, %v1432_v59  ;;  %v1197_v62 = vpop.f32.mrb[49].mxu0 }
 0x3d2   : > { %v1198_v63 = vadd.f32 %v1432_v59, %v1197_v62  ;;  %v1594_v0 = vpop.f32.mrb[50].mxu0 }
 0x3d3   : > { %1262 = vst [vmem:[%s2205_s22 + $0x10] sm:$0xff] %v1206_v61  ;;  %v1209_v1 = vadd.f32 %v1594_v0, %v1432_v59  ;;  %v1200_v2 = vpop.f32.mrb[51].mxu0 }
 0x3d4   : > { %1260 = vst [vmem:[%s2205_s22] sm:$0xff] %v1198_v63  ;;  %v1201_v3 = vadd.f32 %v1432_v59, %v1200_v2 }
 0x3d5   : > { %1263 = vst [vmem:[%s2205_s22 + $0x18] sm:$0xff] %v1209_v1 }
 0x3d6   : > { %1261 = vst [vmem:[%s2205_s22 + $0x8] sm:$0xff] %v1201_v3 }
 0x3e0   : > { %v1597_v37 = vpop.f32.mrb[32].mxu1 }
 0x3e1   : > { %v1222_v4 = vadd.f32 %v1597_v37, %v1432_v59  ;;  %v1213_v5 = vpop.f32.mrb[33].mxu1 }
 0x3e2   : > { %v1214_v6 = vadd.f32 %v1432_v59, %v1213_v5  ;;  %v1598_v7 = vpop.f32.mrb[34].mxu1 }
 0x3e3   : > { %1266 = vst [vmem:[%s2205_s22 + $0x30] sm:$0xff] %v1222_v4  ;;  %v1225_v8 = vadd.f32 %v1598_v7, %v1432_v59  ;;  %v1216_v9 = vpop.f32.mrb[35].mxu1 }
 0x3e4   : > { %1264 = vst [vmem:[%s2205_s22 + $0x20] sm:$0xff] %v1214_v6  ;;  %v1217_v10 = vadd.f32 %v1432_v59, %v1216_v9 }
 0x3e5   : > { %1267 = vst [vmem:[%s2205_s22 + $0x38] sm:$0xff] %v1225_v8 }
 0x3e6   : > { %1265 = vst [vmem:[%s2205_s22 + $0x28] sm:$0xff] %v1217_v10 }
 0x3f0   : > { %v1601_v11 = vpop.f32.mrb[36].mxu1 }
 0x3f1   : > { %v1238_v12 = vadd.f32 %v1601_v11, %v1432_v59  ;;  %v1229_v13 = vpop.f32.mrb[37].mxu1 }
 0x3f2   : > { %v1230_v14 = vadd.f32 %v1432_v59, %v1229_v13  ;;  %v1602_v15 = vpop.f32.mrb[38].mxu1 }
 0x3f3   : > { %1270 = vst [vmem:[%s2205_s22 + $0x50] sm:$0xff] %v1238_v12  ;;  %v1241_v16 = vadd.f32 %v1602_v15, %v1432_v59  ;;  %v1232_v17 = vpop.f32.mrb[39].mxu1 }
 0x3f4   : > { %1268 = vst [vmem:[%s2205_s22 + $0x40] sm:$0xff] %v1230_v14  ;;  %v1233_v18 = vadd.f32 %v1432_v59, %v1232_v17 }
 0x3f5   : > { %1271 = vst [vmem:[%s2205_s22 + $0x58] sm:$0xff] %v1241_v16 }
 0x3f6   : > { %1269 = vst [vmem:[%s2205_s22 + $0x48] sm:$0xff] %v1233_v18 }
 0x400   : > { %v1605_v19 = vpop.f32.mrb[40].mxu1 }
 0x401   : > { %v1254_v20 = vadd.f32 %v1605_v19, %v1432_v59  ;;  %v1245_v21 = vpop.f32.mrb[41].mxu1 }
 0x402   : > { %v1246_v22 = vadd.f32 %v1432_v59, %v1245_v21  ;;  %v1606_v23 = vpop.f32.mrb[42].mxu1 }
 0x403   : > { %1274 = vst [vmem:[%s2205_s22 + $0x70] sm:$0xff] %v1254_v20  ;;  %v1257_v24 = vadd.f32 %v1606_v23, %v1432_v59  ;;  %v1248_v25 = vpop.f32.mrb[43].mxu1 }
 0x404   : > { %1272 = vst [vmem:[%s2205_s22 + $0x60] sm:$0xff] %v1246_v22  ;;  %v1249_v26 = vadd.f32 %v1432_v59, %v1248_v25 }
 0x405   : > { %1275 = vst [vmem:[%s2205_s22 + $0x78] sm:$0xff] %v1257_v24 }
 0x406   : > { %1273 = vst [vmem:[%s2205_s22 + $0x68] sm:$0xff] %v1249_v26 }
 0x407   : > { %1802 = shalt.err (!%p1799_p11)
}
 0x408   : > { %s1803_s27 = scalar_lea.hbm %s2225_s15, 2048  ;;  %s1807_s16 = scalar_lea.hbm %s2284_s9, 4096 }
 0x409   : > { %p1804_p13 = scmp.ne.s32.totalorder %s2225_s15, %s1803_s27  ;;  %p1808_p6 = scmp.lt.u32.totalorder %s2225_s15, %s2284_s9 }
 0x40a   : > { %p1809_p9 = scmp.lt.u32.totalorder %s1807_s16, %s1803_s27  ;;  %p1811_p10 = scmp.lt.u32.totalorder %s1803_s27, %s2225_s15 }
 0x40b   : > { %p1805_p5 = pnand %p1804_p13, %p2303_p1 }
 0x40c   : > { %p1810_p12 = por %p1809_p9, %p1808_p6 }
 0x40d   : > { %p1806_p0 = pneg %p1805_p5 }
 0x40e   : > { %p1812_p2 = por %p1811_p10, %p1810_p12 }
 0x410   : > { %p1813_p3 = pnand %p1812_p2, %p1806_p0 }
 0x412   : > { %1816 = shalt.err (!%p1813_p3)
}
 0x413   : > { %s1867_s25 = smov 128   ;;  %s1868_s29 = smov 8  }
 0x414   : > { %1631 = dma.vmem_to_hbm [thread:$0]  (%p2303_p1), %s2227_s23, 2048, %s2225_s15, %s2234_s13, %s1867_s25, %s1867_s25, %s1868_s29  }
 0x415 PF: > { %p1648_p4 = scmp.ge.s32.totalorder %s1859_s12, 2  ;;  %s1305_s11 = sand.u32 1, %s1847_s30  }
 0x416   : > { %p2304_p7 = scmp.ne.s32.totalorder %s2295_s20, 0  ;;  %s1306_s18 = scalar_lea.sflag [#allocation4], %s1305_s11 }
 0x418   : > { %p1641_p8 = pnand %p1648_p4, %p2304_p7 }
 0x41a   : > { %1842 = dma.done.wait (!%p1641_p8), %s1306_s18, 2048  }
 0x41b   : > { %1844 = vsyncadd (!%p1641_p8), %s1306_s18, 4294965248  ;;  %s2305_s12 = sld [smem:[#allocation12_spill]]  ;;  %s2306_s21 = sld [smem:[#allocation11_spill]] }
 0x41c   : > { %s2307_s11 = sld [smem:[#allocation13_spill]]  ;;  %s2308_s30 = smov %s1851_s10 }
 0x421   : > { %p21_p11 = scmp.ge.s32.totalorder %s2305_s12, 4   ;;  %s2309_s10 = smov %s2306_s21 }
 0x423   :  { %23 = sbr.rel (!%p21_p11) target bundleno = 5 (0x5), region = 100 }
 0x42a   :  { %1311 = vsyncpa [#allocation3], 1 }
 0x42b   :  { %1313 = vsyncpa [#allocation3 + $0x1], 1 }
 0x42c   :  { %1314 = vsyncpa [#allocation6], 1 }
 0x42d   :  { %1315 = vsyncpa [#allocation4], 1 }
 0x42e   :  { %1317 = vsyncpa [#allocation4 + $0x1], 1 }

</bundles_post_ra>
